<compile_context>
chip_gen: v7x
topology: tpu7x:2x2x1
jax: 0.10.0
libtpu: 0.0.40
codegen_flags: <defaults>
</compile_context>

<pallas_src>
import functools

import jax
import jax.numpy as jnp
from jax import lax
from jax.experimental import pallas as pl
from jax.experimental.pallas import tpu as pltpu

EPS = 1e-3
LANES = 128
ALIGN = 8 * LANES          # 1024: elements per (8,128) tile row-group
TM_MAX = 1024              # rows per grid step (DMA tile); >=512 keeps ~85%+ of HBM roofline
SUB = 128                  # rows per inner accumulation chunk (bounds vreg live ranges)
N_CORES_MAX = 2            # leading parallel axis (v7x dual TensorCore; harmless on 1-TC chips)
SMALL_N_FAST_PATH = 65536  # below this, a fused XLA reduction beats a pallas_call launch


def _cdiv(a, b):
    return (a + b - 1) // b


def _silog_reduce_kernel(x_ref, t_ref, sum_ref, sq_ref, *,
                         tm, sub, nsub, bpc, rows_main, need_mask):
    """Accumulate per-(sublane, lane) partial sums of g and g*g.

    x_ref, t_ref : (tm, 128) VMEM tiles of the flattened inputs (native dtype)
    sum_ref      : (1, 8, 128) per-core resident accumulator of sum(g)
    sq_ref       : (1, 8, 128) per-core resident accumulator of sum(g*g)
    """
    p = pl.program_id(0)            # core / parallel axis
    i = pl.program_id(1)            # streaming axis (arbitrary / reduction)

    @pl.when(i == 0)
    def _init():
        sum_ref[...] = jnp.zeros_like(sum_ref)
        sq_ref[...] = jnp.zeros_like(sq_ref)

    # Logical (unclamped) first row of this tile; used for partial / redundant
    # block masking.
    row0 = (p * bpc + i) * tm

    def accumulate(x_tile, t_tile, offset, carry):
        s, s2 = carry
        x = x_tile.astype(jnp.float32)          # cast in-kernel, not in wrapper
        t = t_tile.astype(jnp.float32)
        g = jnp.log(x + EPS) - jnp.log(t + EPS)
        if need_mask:
            r = lax.broadcasted_iota(jnp.int32, (sub, 1), 0)
            # Mask BEFORE squaring: garbage rows (possibly NaN after log of
            # negative garbage) are replaced by 0 via where-select, so they
            # contribute exactly 0 to BOTH sums.
            g = jnp.where(row0 + offset + r < rows_main, g, 0.0)
        # (sub,128) -> (sub//8, 8, 128) is a tile-aligned free reshape; the sum
        # over axis 0 is pure VPU adds (no cross-sublane XLU work, no stack).
        s = s + jnp.sum(g.reshape(sub // 8, 8, LANES), axis=0)
        s2 = s2 + jnp.sum((g * g).reshape(sub // 8, 8, LANES), axis=0)
        return s, s2

    zero = jnp.zeros((8, LANES), jnp.float32)
    if nsub == 1:
        s, s2 = accumulate(x_ref[...], t_ref[...], 0, (zero, zero))
    else:
        def body(c, carry):
            start = pl.multiple_of(c * sub, sub)
            return accumulate(x_ref[pl.ds(start, sub), :],
                              t_ref[pl.ds(start, sub), :],
                              c * sub, carry)
        s, s2 = lax.fori_loop(0, nsub, body, (zero, zero), unroll=True)

    sum_ref[...] += s[None]
    sq_ref[...] += s2[None]


def _make_input_spec(tm, in_map, buffers):
    """Input BlockSpec; request deeper pipelining when the grid is long enough."""
    if buffers > 2:
        try:
            return pl.BlockSpec((tm, LANES), in_map,
                                pipeline_mode=pl.Buffered(buffers))
        except (TypeError, AttributeError):
            pass   # older API without pipeline_mode: fall back to default depth
    return pl.BlockSpec((tm, LANES), in_map)


def _silog_jax(pred, target):
    """Plain fused-XLA reference formula (small-input fast path)."""
    g = jnp.log(pred.astype(jnp.float32) + EPS) - jnp.log(
        target.astype(jnp.float32) + EPS)
    n = g.size
    mean_g = jnp.mean(g)
    var_g = jnp.sum((g - mean_g) ** 2) / max(n - 1, 1)
    return jnp.sqrt(jnp.maximum(var_g, 0.0) + 0.15 * mean_g * mean_g)


@functools.partial(jax.jit, static_argnames=("small_n_threshold",))
def silog_loss(pred, target, *, small_n_threshold=SMALL_N_FAST_PATH):
    """SILogLoss forward.  pred/target: arrays of identical shape (e.g. NCHW)."""
    assert pred.shape == target.shape
    n = pred.size
    n_main = (n // ALIGN) * ALIGN        # 1024-aligned prefix handled by the kernel

    # Small-input fast path (and the degenerate "everything is tail" case).
    if n < small_n_threshold or n_main == 0:
        return _silog_jax(pred, target)

    pred_flat = pred.reshape(-1)
    target_flat = target.reshape(-1)
    rows_main = n_main // LANES          # multiple of 8 by construction

    if n_main == n:
        # Pure reshape: layout-compatible, no HBM copy.
        x2d = pred_flat.reshape(rows_main, LANES)
        t2d = target_flat.reshape(rows_main, LANES)
    else:
        # Contiguous prefix slice (no padded full copy; tail handled in JAX below).
        x2d = pred_flat[:n_main].reshape(rows_main, LANES)
        t2d = target_flat[:n_main].reshape(rows_main, LANES)

    # Static tiling decisions (shapes are known at trace time).
    if rows_main >= TM_MAX:
        tm, sub = TM_MAX, SUB
    else:
        tm, sub = rows_main, rows_main   # rows_main is a multiple of 8
    nsub = tm // sub
    total_blocks = _cdiv(rows_main, tm)
    n_cores = 1 if total_blocks < 2 else N_CORES_MAX
    bpc = _cdiv(total_blocks, n_cores)   # blocks per core
    # Mask needed iff the last block is partial or a core gets a redundant block.
    need_mask = (total_blocks * tm != rows_main) or (n_cores * bpc != total_blocks)

    def in_map(p, i):
        # Clamp so the DMA always targets an in-range block; redundant /
        # out-of-range logical blocks contribute 0 via the in-kernel row mask.
        return (jnp.minimum(p * bpc + i, total_blocks - 1), 0)

    kernel = functools.partial(
        _silog_reduce_kernel, tm=tm, sub=sub, nsub=nsub,
        bpc=bpc, rows_main=rows_main, need_mask=need_mask)

    in_spec = _make_input_spec(tm, in_map, buffers=3 if bpc >= 3 else 2)

    sum_parts, sq_parts = pl.pallas_call(
        kernel,
        out_shape=(jax.ShapeDtypeStruct((n_cores, 8, LANES), jnp.float32),
                   jax.ShapeDtypeStruct((n_cores, 8, LANES), jnp.float32)),
        grid_spec=pltpu.PrefetchScalarGridSpec(
            num_scalar_prefetch=0,
            grid=(n_cores, bpc),
            in_specs=[in_spec, in_spec],
            out_specs=[pl.BlockSpec((1, 8, LANES), lambda p, i: (p, 0, 0)),
                       pl.BlockSpec((1, 8, LANES), lambda p, i: (p, 0, 0))],
        ),
        compiler_params=pltpu.CompilerParams(
            dimension_semantics=("parallel", "arbitrary")),
    )(x2d, t2d)

    sum_g = jnp.sum(sum_parts)
    sum_g2 = jnp.sum(sq_parts)

    # Ragged tail (< 1024 elements): fold its contribution in with plain JAX
    # instead of padding + re-streaming the whole tensor.
    if n_main != n:
        tail_x = pred_flat[n_main:].astype(jnp.float32)
        tail_t = target_flat[n_main:].astype(jnp.float32)
        g_tail = jnp.log(tail_x + EPS) - jnp.log(tail_t + EPS)
        sum_g = sum_g + jnp.sum(g_tail)
        sum_g2 = sum_g2 + jnp.sum(g_tail * g_tail)

    n_f = jnp.float32(n)
    mean_g = sum_g / n_f
    # unbiased variance (torch.var default, correction=1); guard n < 2.
    var_g = (sum_g2 - n_f * mean_g * mean_g) / jnp.maximum(n_f - 1.0, 1.0)
    dg = jnp.maximum(var_g, 0.0) + 0.15 * mean_g * mean_g
    return jnp.sqrt(dg)


def _silog_ref(pred, target):
    g = jnp.log(pred.astype(jnp.float32) + EPS) - jnp.log(
        target.astype(jnp.float32) + EPS)
    mean_g = jnp.mean(g)
    var_g = jnp.sum((g - mean_g) ** 2) / (g.size - 1)
    return jnp.sqrt(var_g + 0.15 * mean_g ** 2)


if __name__ == "__main__":
    key = jax.random.PRNGKey(0)
    k1, k2, k3, k4 = jax.random.split(key, 4)

    # Small NCHW shape implied by the module (depth-like positive values).
    pred = jax.random.uniform(k1, (2, 4, 16, 16), jnp.float32, 0.1, 10.0)
    target = jax.random.uniform(k2, (2, 4, 16, 16), jnp.float32, 0.1, 10.0)

    # Force the Pallas path at this tiny size so the kernel itself runs.
    loss = jax.block_until_ready(silog_loss(pred, target, small_n_threshold=0))
    ref = _silog_ref(pred, target)
    assert jnp.allclose(loss, ref, rtol=1e-4, atol=1e-6), (loss, ref)

    # Default call takes the small-input fast path; must agree with the reference.
    loss_fast = jax.block_until_ready(silog_loss(pred, target))
    assert jnp.allclose(loss_fast, ref, rtol=1e-4, atol=1e-6), (loss_fast, ref)

    # Coverage check: multi-block grid, 2-core split, partial-block row mask,
    # and the ragged (<1024-element) tail path.
    p2 = jax.random.uniform(k3, (1, 3, 300, 300), jnp.float32, 0.1, 10.0)
    t2 = jax.random.uniform(k4, (1, 3, 300, 300), jnp.float32, 0.1, 10.0)
    loss2 = jax.block_until_ready(silog_loss(p2, t2, small_n_threshold=0))
    ref2 = _silog_ref(p2, t2)
    assert jnp.allclose(loss2, ref2, rtol=1e-4, atol=1e-6), (loss2, ref2)

    print("KERNEL_OK")
</pallas_src>

<mosaic_0001>
module attributes {stable_mosaic.version = 11 : i64} {
  func.func @_silog_reduce_kernel(%arg0: i32, %arg1: i32, %arg2: memref<16x128xf32, #tpu.memory_space<vmem>>, %arg3: memref<16x128xf32, #tpu.memory_space<vmem>>, %arg4: memref<1x8x128xf32, #tpu.memory_space<vmem>>, %arg5: memref<1x8x128xf32, #tpu.memory_space<vmem>>) attributes {dimension_semantics = [#tpu.dimension_semantics<parallel>, #tpu.dimension_semantics<arbitrary>], iteration_bounds = array<i64: 1, 1>, scalar_prefetch = 0 : i64, scratch_operands = 0 : i64, tpu.core_type = #tpu.core_type<tc>, window_params = [{transform_indices = @transform_0, window_bounds = array<i64: 16, 128>}, {transform_indices = @transform_1, window_bounds = array<i64: 16, 128>}, {transform_indices = @transform_2, window_bounds = array<i64: 1, 8, 128>}, {transform_indices = @transform_3, window_bounds = array<i64: 1, 8, 128>}]} {
    %c0_i32 = arith.constant 0 : i32
    %0 = arith.cmpi eq, %arg1, %c0_i32 : i32
    %1 = arith.extui %0 : i1 to i32
    %c0_i32_0 = arith.constant 0 : i32
    %2 = arith.cmpi ne, %1, %c0_i32_0 : i32
    scf.if %2 {
      %cst_20 = arith.constant 0.000000e+00 : f32
      %28 = vector.broadcast %cst_20 : f32 to vector<1x8x128xf32>
      %c0_21 = arith.constant 0 : index
      %c0_22 = arith.constant 0 : index
      %c0_23 = arith.constant 0 : index
      %29 = vector.load %arg4[%c0_21, %c0_22, %c0_23] : memref<1x8x128xf32, #tpu.memory_space<vmem>>, vector<1x8x128xf32>
      tpu.vector_store %arg4[%c0_21, %c0_22, %c0_23], %28 {strides = array<i32>} : memref<1x8x128xf32, #tpu.memory_space<vmem>>, vector<1x8x128xf32>,
      %cst_24 = arith.constant 0.000000e+00 : f32
      %30 = vector.broadcast %cst_24 : f32 to vector<1x8x128xf32>
      %c0_25 = arith.constant 0 : index
      %c0_26 = arith.constant 0 : index
      %c0_27 = arith.constant 0 : index
      %31 = vector.load %arg5[%c0_25, %c0_26, %c0_27] : memref<1x8x128xf32, #tpu.memory_space<vmem>>, vector<1x8x128xf32>
      tpu.vector_store %arg5[%c0_25, %c0_26, %c0_27], %30 {strides = array<i32>} : memref<1x8x128xf32, #tpu.memory_space<vmem>>, vector<1x8x128xf32>,
    } else {
    }
    %cst = arith.constant 0.000000e+00 : f32
    %3 = vector.broadcast %cst : f32 to vector<8x128xf32>
    %c0 = arith.constant 0 : index
    %c0_1 = arith.constant 0 : index
    %4 = vector.load %arg2[%c0, %c0_1] : memref<16x128xf32, #tpu.memory_space<vmem>>, vector<16x128xf32>
    %c0_2 = arith.constant 0 : index
    %c0_3 = arith.constant 0 : index
    %5 = vector.load %arg3[%c0_2, %c0_3] : memref<16x128xf32, #tpu.memory_space<vmem>>, vector<16x128xf32>
    %cst_4 = arith.constant 1.000000e-03 : f32
    %6 = vector.broadcast %cst_4 : f32 to vector<16x128xf32>
    %7 = arith.addf %4, %6 : vector<16x128xf32>
    %8 = math.log %7 : vector<16x128xf32>
    %cst_5 = arith.constant 1.000000e-03 : f32
    %9 = vector.broadcast %cst_5 : f32 to vector<16x128xf32>
    %10 = arith.addf %5, %9 : vector<16x128xf32>
    %11 = math.log %10 : vector<16x128xf32>
    %12 = arith.subf %8, %11 : vector<16x128xf32>
    %13 = vector.shape_cast %12 : vector<16x128xf32> to vector<2x8x128xf32>
    %cst_6 = arith.constant dense<0.000000e+00> : vector<8x128xf32>
    %14 = vector.multi_reduction <add>, %13, %cst_6 [0] : vector<2x8x128xf32> to vector<8x128xf32>
    %15 = arith.addf %3, %14 : vector<8x128xf32>
    %16 = arith.mulf %12, %12 : vector<16x128xf32>
    %17 = vector.shape_cast %16 : vector<16x128xf32> to vector<2x8x128xf32>
    %cst_7 = arith.constant dense<0.000000e+00> : vector<8x128xf32>
    %18 = vector.multi_reduction <add>, %17, %cst_7 [0] : vector<2x8x128xf32> to vector<8x128xf32>
    %19 = arith.addf %3, %18 : vector<8x128xf32>
    %c0_8 = arith.constant 0 : index
    %c0_9 = arith.constant 0 : index
    %c0_10 = arith.constant 0 : index
    %20 = vector.load %arg4[%c0_8, %c0_9, %c0_10] : memref<1x8x128xf32, #tpu.memory_space<vmem>>, vector<1x8x128xf32>
    %21 = vector.shape_cast %15 : vector<8x128xf32> to vector<1x8x128xf32>
    %22 = arith.addf %20, %21 : vector<1x8x128xf32>
    %c0_11 = arith.constant 0 : index
    %c0_12 = arith.constant 0 : index
    %c0_13 = arith.constant 0 : index
    %23 = vector.load %arg4[%c0_11, %c0_12, %c0_13] : memref<1x8x128xf32, #tpu.memory_space<vmem>>, vector<1x8x128xf32>
    tpu.vector_store %arg4[%c0_11, %c0_12, %c0_13], %22 {strides = array<i32>} : memref<1x8x128xf32, #tpu.memory_space<vmem>>, vector<1x8x128xf32>,
    %c0_14 = arith.constant 0 : index
    %c0_15 = arith.constant 0 : index
    %c0_16 = arith.constant 0 : index
    %24 = vector.load %arg5[%c0_14, %c0_15, %c0_16] : memref<1x8x128xf32, #tpu.memory_space<vmem>>, vector<1x8x128xf32>
    %25 = vector.shape_cast %19 : vector<8x128xf32> to vector<1x8x128xf32>
    %26 = arith.addf %24, %25 : vector<1x8x128xf32>
    %c0_17 = arith.constant 0 : index
    %c0_18 = arith.constant 0 : index
    %c0_19 = arith.constant 0 : index
    %27 = vector.load %arg5[%c0_17, %c0_18, %c0_19] : memref<1x8x128xf32, #tpu.memory_space<vmem>>, vector<1x8x128xf32>
    tpu.vector_store %arg5[%c0_17, %c0_18, %c0_19], %26 {strides = array<i32>} : memref<1x8x128xf32, #tpu.memory_space<vmem>>, vector<1x8x128xf32>,
    return
  }
  func.func @transform_0(%arg0: i32, %arg1: i32) -> (i32, i32) {
    %c1_i32 = arith.constant 1 : i32
    %0 = arith.muli %arg0, %c1_i32 : i32
    %1 = arith.addi %0, %arg1 : i32
    %c0_i32 = arith.constant 0 : i32
    %2 = arith.minsi %1, %c0_i32 : i32
    %c0_i32_0 = arith.constant 0 : i32
    %c0_i32_1 = arith.constant 0 : i32
    return %2, %c0_i32_0 : i32, i32
  }
  func.func @transform_1(%arg0: i32, %arg1: i32) -> (i32, i32) {
    %c1_i32 = arith.constant 1 : i32
    %0 = arith.muli %arg0, %c1_i32 : i32
    %1 = arith.addi %0, %arg1 : i32
    %c0_i32 = arith.constant 0 : i32
    %2 = arith.minsi %1, %c0_i32 : i32
    %c0_i32_0 = arith.constant 0 : i32
    %c0_i32_1 = arith.constant 0 : i32
    return %2, %c0_i32_0 : i32, i32
  }
  func.func @transform_2(%arg0: i32, %arg1: i32) -> (i32, i32, i32) {
    %c0_i32 = arith.constant 0 : i32
    %c0_i32_0 = arith.constant 0 : i32
    %c0_i32_1 = arith.constant 0 : i32
    return %arg0, %c0_i32, %c0_i32_0 : i32, i32, i32
  }
  func.func @transform_3(%arg0: i32, %arg1: i32) -> (i32, i32, i32) {
    %c0_i32 = arith.constant 0 : i32
    %c0_i32_0 = arith.constant 0 : i32
    %c0_i32_1 = arith.constant 0 : i32
    return %arg0, %c0_i32, %c0_i32_0 : i32, i32, i32
  }
}

</mosaic_0001>

<bundles_post_ra>
// kernel: silog_loss.1
= control target key start
LH: loop header
LB: loop body
LE: loop exit
PB: predicated region body
PF: predicated region fallthrough
CT: control target
= control target key end

     0   :  { %s180_s0 = inlined_call_operand.vmem [shape: f32[16,128], index: 0, kind: input, shape index: {}]   ;;  %s181_s1 = inlined_call_operand.vmem [shape: f32[16,128], index: 1, kind: input, shape index: {}]   ;;  %s182_s2 = inlined_call_operand.vmem [shape: f32[1,8,128], index: 2, kind: output, shape index: {0}]   ;;  %s183_s3 = inlined_call_operand.vmem [shape: f32[1,8,128], index: 3, kind: output, shape index: {1}]  }
   0x1   :  { %v83_v0 = vld [vmem:[%s180_s0] sm:$0xff]  ;;  %v84_v1 = vld [vmem:[%s180_s0 + $0x8] sm:$0xff] }
   0x2   :  { %v85_v2 = vld [vmem:[%s181_s1] sm:$0xff]  ;;  %v86_v3 = vld [vmem:[%s181_s1 + $0x8] sm:$0xff]  ;;  %v87_v4 = vadd.f32 0.001, %v83_v0  ;;  %v88_v5 = vadd.f32 0.001, %v84_v1 }
   0x3   :  { %v93_v6 = vadd.f32 0.001, %v85_v2  ;;  %v94_v7 = vadd.f32 0.001, %v86_v3 }
   0x4   :  { %134 = vlog2.f32 %v87_v4 }
   0x5   :  { %136 = vlog2.f32 %v88_v5 }
   0x6   :  { %138 = vlog2.f32 %v93_v6 }
   0x7   :  { %140 = vlog2.f32 %v94_v7 }
   0xe   :  { %v135_v8 = vpop.eup %134 }
   0xf   :  { %v137_v9 = vpop.eup %136  ;;  %v90_v10 = vmul.f32 0.6931472, %v135_v8 }
  0x10   :  { %v139_v11 = vpop.eup %138  ;;  %v92_v12 = vmul.f32 0.6931472, %v137_v9 }
  0x11   :  { %v141_v13 = vpop.eup %140  ;;  %v96_v14 = vmul.f32 0.6931472, %v139_v11 }
  0x12   :  { %v98_v15 = vmul.f32 0.6931472, %v141_v13 }
  0x13   :  { %v99_v16 = vsub.f32 %v90_v10, %v96_v14 }
  0x14   :  { %v100_v17 = vsub.f32 %v92_v12, %v98_v15 }
  0x15   :  { %v103_v18 = vmul.f32 %v99_v16, %v99_v16 }
  0x16   :  { %v101_v19 = vadd.f32 %v100_v17, %v99_v16  ;;  %v104_v20 = vmul.f32 %v100_v17, %v100_v17 }
  0x18   :  { %v105_v21 = vadd.f32 %v104_v20, %v103_v18  ;;  %109 = vst [vmem:[%s182_s2] sm:$0xff] %v101_v19 }
  0x1a   :  { %112 = vst [vmem:[%s183_s3] sm:$0xff] %v105_v21 }

</bundles_post_ra>
